<compile_context>
chip_gen: v7x
topology: tpu7x:2x2x1
jax: 0.10.0
libtpu: 0.0.40
codegen_flags: <defaults>
</compile_context>

<pallas_src>
import functools

import jax
import jax.numpy as jnp
from jax.experimental import pallas as pl
from jax.experimental.pallas import tpu as pltpu


def _round_up(n, m):
    return ((n + m - 1) // m) * m


def mlp_kernel(x_ref, w1_ref, w2_ref, w3_ref, out_ref, *, num_classes):
    """Whole-MLP forward for one batch tile, fully VMEM resident.

    x_ref   : (TB, D)        bf16/f32 flattened input tile
    w1_ref  : (D,   H1P)     bf16 pre-transposed weight, out-dim zero-padded to 128
    w2_ref  : (H1P, H2P)     bf16 pre-transposed weight, zero-padded
    w3_ref  : (H2P, NCP)     bf16 pre-transposed weight, zero-padded
    out_ref : (TB, NCP)      bf16 softmax probs (cols >= num_classes are 0)
    """
    # No-op when x already arrives as bf16 (the recommended path).
    x = x_ref[...].astype(jnp.bfloat16)

    # Layer 1: Linear + ReLU (f32 accumulation on the MXU).
    h1 = jnp.dot(x, w1_ref[...], preferred_element_type=jnp.float32)
    h1 = jnp.maximum(h1, 0.0).astype(jnp.bfloat16)

    # Layer 2: Linear + ReLU. Zero-padded lanes of h1 hit zero weight rows -> no effect.
    h2 = jnp.dot(h1, w2_ref[...], preferred_element_type=jnp.float32)
    h2 = jnp.maximum(h2, 0.0).astype(jnp.bfloat16)

    # Layer 3: Linear (logits on a 128-lane padded class dim).
    logits = jnp.dot(h2, w3_ref[...], preferred_element_type=jnp.float32)

    # Mask padded class lanes so they get zero probability.
    lane = jax.lax.broadcasted_iota(jnp.int32, logits.shape, 1)
    logits = jnp.where(lane < num_classes, logits, -jnp.inf)

    # Numerically stable softmax over classes; exact EUP reciprocal (free: DMA-bound).
    m = jnp.max(logits, axis=1, keepdims=True)
    e = jnp.exp(logits - m)
    denom = jnp.sum(e, axis=1, keepdims=True)
    out_ref[...] = (e * pl.reciprocal(denom, approx=False)).astype(out_ref.dtype)


def prepare_params(w1, w2, w3):
    """One-time parameter prep (hoisted out of the per-call forward).

    Takes torch-layout (out_features, in_features) f32 weights, returns bf16
    weights transposed to (in, out) with out-dims zero-padded to 128 lanes.
    """
    D = w1.shape[1]
    H1, H2, NC = w1.shape[0], w2.shape[0], w3.shape[0]
    H1P, H2P, NCP = _round_up(H1, 128), _round_up(H2, 128), _round_up(NC, 128)

    w1t = jnp.zeros((D, H1P), jnp.bfloat16).at[:, :H1].set(w1.T.astype(jnp.bfloat16))
    w2t = jnp.zeros((H1P, H2P), jnp.bfloat16).at[:H1, :H2].set(w2.T.astype(jnp.bfloat16))
    w3t = jnp.zeros((H2P, NCP), jnp.bfloat16).at[:H2, :NC].set(w3.T.astype(jnp.bfloat16))
    return w1t, w2t, w3t


def _pick_batch_tile(B):
    """Batch tile: single tile at toy sizes; at scale, 1024-row tiles with at least
    two grid steps so the 'parallel' axis can shard across v7x's two TensorCores."""
    if B <= 512:
        return B  # block dim == full array dim (satisfies the (8,128) rule)
    tb = min(1024, _round_up(pl.cdiv(B, 2), 8))
    return min(tb, B)


@functools.partial(jax.jit, static_argnames=("num_classes", "return_padded"))
def mlp_forward(x_nchw, w1t, w2t, w3t, *, num_classes, return_padded=False):
    """x_nchw: (B, C, H, W), ideally bf16 (produced upstream). w*t: prepared params."""
    B = x_nchw.shape[0]
    x_flat = x_nchw.reshape(B, -1)  # glue: flatten NCHW per-sample (row-major)

    D = x_flat.shape[1]
    H1P = w1t.shape[1]
    H2P = w2t.shape[1]
    NCP = w3t.shape[1]

    TB = _pick_batch_tile(B)
    grid = (pl.cdiv(B, TB),)

    # VMEM footprint: double-buffered x tile + double-buffered output tile + weights.
    x_bytes = jnp.dtype(x_flat.dtype).itemsize
    footprint = (2 * TB * D * x_bytes
                 + 2 * TB * NCP * 2
                 + 2 * (w1t.size + w2t.size + w3t.size))
    vmem_limit = int(min(48 << 20, max(32 << 20, footprint + (4 << 20))))

    cost = pl.CostEstimate(
        flops=2 * B * (D * H1P + H1P * H2P + H2P * NCP),
        transcendentals=B * NCP,
        bytes_accessed=(x_flat.size * x_bytes
                        + 2 * (w1t.size + w2t.size + w3t.size)
                        + B * NCP * 2),
    )

    out = pl.pallas_call(
        functools.partial(mlp_kernel, num_classes=num_classes),
        out_shape=jax.ShapeDtypeStruct((B, NCP), jnp.bfloat16),
        grid_spec=pltpu.PrefetchScalarGridSpec(
            num_scalar_prefetch=0,
            grid=grid,
            in_specs=[
                pl.BlockSpec((TB, D), lambda i: (i, 0)),       # activations: tiled over B
                pl.BlockSpec((D, H1P), lambda i: (0, 0)),      # weights: resident
                pl.BlockSpec((H1P, H2P), lambda i: (0, 0)),
                pl.BlockSpec((H2P, NCP), lambda i: (0, 0)),
            ],
            out_specs=pl.BlockSpec((TB, NCP), lambda i: (i, 0)),
        ),
        compiler_params=pltpu.CompilerParams(
            dimension_semantics=("parallel",),
            vmem_limit_bytes=vmem_limit,
        ),
        cost_estimate=cost,
    )(x_flat, w1t, w2t, w3t)

    if return_padded:
        return out  # (B, NCP) bf16 slab; padded class lanes are exactly 0
    return out[:, :num_classes]


def kaiming_uniform(key, out_features, in_features):
    # Matches the module's init(): nn.init.kaiming_uniform_(w) with default a=0
    # => bound = sqrt(2) * sqrt(3 / fan_in) = sqrt(6 / fan_in)
    bound = jnp.sqrt(6.0 / in_features)
    return jax.random.uniform(
        key, (out_features, in_features), jnp.float32, -bound, bound
    )


def mlp_reference(x_nchw, w1, w2, w3):
    """Pure-JAX f32 reference of the torch module's forward."""
    xf = x_nchw.reshape(x_nchw.shape[0], -1).astype(jnp.float32)
    h1 = jnp.maximum(xf @ w1.T, 0.0)
    h2 = jnp.maximum(h1 @ w2.T, 0.0)
    return jax.nn.softmax(h2 @ w3.T, axis=1)


if __name__ == "__main__":
    # Module config: input_shape=(ch, w, h)=(4, 16, 16), num_classes=10,
    # hidden_sizes=[10, 10], activation='relu', bias=False.
    B, CH, W, H = 2, 4, 16, 16
    input_size = CH * W * H          # 1024
    hidden_sizes = [10, 10]
    num_classes = 10

    key = jax.random.PRNGKey(0)
    kx, k1, k2, k3 = jax.random.split(key, 4)

    # Activations produced in bf16 upstream (no extra wrapper-side cast pass).
    x = jax.random.normal(kx, (B, CH, W, H), jnp.bfloat16)

    # torch.nn.Linear weights have shape (out_features, in_features)
    w1 = kaiming_uniform(k1, hidden_sizes[0], input_size)
    w2 = kaiming_uniform(k2, hidden_sizes[1], hidden_sizes[0])
    w3 = kaiming_uniform(k3, num_classes, hidden_sizes[1])

    # One-time parameter preparation (transpose + pad + bf16).
    w1t, w2t, w3t = prepare_params(w1, w2, w3)

    out = mlp_forward(x, w1t, w2t, w3t, num_classes=num_classes)
    out = jax.block_until_ready(out)

    # Sanity: shape, softmax rows sum to ~1 (bf16 output), non-negative, close to ref.
    assert out.shape == (B, num_classes)
    rowsum = jnp.sum(out.astype(jnp.float32), axis=1)
    assert jnp.allclose(rowsum, 1.0, atol=2e-2), rowsum
    assert bool(jnp.all(out >= 0.0))

    ref = mlp_reference(x, w1, w2, w3)
    assert jnp.allclose(out.astype(jnp.float32), ref, atol=3e-2), (
        jnp.max(jnp.abs(out.astype(jnp.float32) - ref)))

    print("KERNEL_OK")
</pallas_src>

<mosaic_0001>
module attributes {stable_mosaic.version = 11 : i64} {
  func.func @mlp_kernel(%arg0: i32, %arg1: memref<2x1024xbf16, #tpu.memory_space<vmem>>, %arg2: memref<1024x128xbf16, #tpu.memory_space<vmem>>, %arg3: memref<128x128xbf16, #tpu.memory_space<vmem>>, %arg4: memref<128x128xbf16, #tpu.memory_space<vmem>>, %arg5: memref<2x128xbf16, #tpu.memory_space<vmem>>) attributes {dimension_semantics = [#tpu.dimension_semantics<parallel>], iteration_bounds = array<i64: 1>, scalar_prefetch = 0 : i64, scratch_operands = 0 : i64, tpu.core_type = #tpu.core_type<tc>, window_params = [{transform_indices = @transform_0, window_bounds = array<i64: 2, 1024>}, {pipeline_mode = #tpu.pipeline_mode<synchronous>, transform_indices = @transform_1, window_bounds = array<i64: 1024, 128>}, {pipeline_mode = #tpu.pipeline_mode<synchronous>, transform_indices = @transform_2, window_bounds = array<i64: 128, 128>}, {pipeline_mode = #tpu.pipeline_mode<synchronous>, transform_indices = @transform_3, window_bounds = array<i64: 128, 128>}, {transform_indices = @transform_4, window_bounds = array<i64: 2, 128>}]} {
    %c0 = arith.constant 0 : index
    %c0_0 = arith.constant 0 : index
    %0 = vector.load %arg1[%c0, %c0_0] : memref<2x1024xbf16, #tpu.memory_space<vmem>>, vector<2x1024xbf16>
    %c0_1 = arith.constant 0 : index
    %c0_2 = arith.constant 0 : index
    %1 = vector.load %arg2[%c0_1, %c0_2] : memref<1024x128xbf16, #tpu.memory_space<vmem>>, vector<1024x128xbf16>
    %cst = arith.constant dense<0.000000e+00> : vector<2x128xf32>
    %2 = tpu.matmul %0, %1, %cst {dimension_numbers = #tpu.dot_dimension_numbers<[1], [0], [0], [1], [0, 0, 1, 1], [], []>} : vector<2x1024xbf16>, vector<1024x128xbf16>, vector<2x128xf32> -> vector<2x128xf32>
    %cst_3 = arith.constant 0.000000e+00 : f32
    %3 = vector.broadcast %cst_3 : f32 to vector<2x128xf32>
    %4 = arith.maximumf %2, %3 : vector<2x128xf32>
    %5 = arith.truncf %4 : vector<2x128xf32> to vector<2x128xbf16>
    %c0_4 = arith.constant 0 : index
    %c0_5 = arith.constant 0 : index
    %6 = vector.load %arg3[%c0_4, %c0_5] : memref<128x128xbf16, #tpu.memory_space<vmem>>, vector<128x128xbf16>
    %cst_6 = arith.constant dense<0.000000e+00> : vector<2x128xf32>
    %7 = tpu.matmul %5, %6, %cst_6 {dimension_numbers = #tpu.dot_dimension_numbers<[1], [0], [0], [1], [0, 0, 1, 1], [], []>} : vector<2x128xbf16>, vector<128x128xbf16>, vector<2x128xf32> -> vector<2x128xf32>
    %cst_7 = arith.constant 0.000000e+00 : f32
    %8 = vector.broadcast %cst_7 : f32 to vector<2x128xf32>
    %9 = arith.maximumf %7, %8 : vector<2x128xf32>
    %10 = arith.truncf %9 : vector<2x128xf32> to vector<2x128xbf16>
    %c0_8 = arith.constant 0 : index
    %c0_9 = arith.constant 0 : index
    %11 = vector.load %arg4[%c0_8, %c0_9] : memref<128x128xbf16, #tpu.memory_space<vmem>>, vector<128x128xbf16>
    %cst_10 = arith.constant dense<0.000000e+00> : vector<2x128xf32>
    %12 = tpu.matmul %10, %11, %cst_10 {dimension_numbers = #tpu.dot_dimension_numbers<[1], [0], [0], [1], [0, 0, 1, 1], [], []>} : vector<2x128xbf16>, vector<128x128xbf16>, vector<2x128xf32> -> vector<2x128xf32>
    %13 = tpu.iota {dimensions = array<i32: 1>} : vector<2x128xi32>
    %c10_i32 = arith.constant 10 : i32
    %14 = vector.broadcast %c10_i32 : i32 to vector<2x128xi32>
    %15 = arith.cmpi slt, %13, %14 : vector<2x128xi32>
    %cst_11 = arith.constant 0xFF800000 : f32
    %16 = vector.broadcast %cst_11 : f32 to vector<2x128xf32>
    %17 = arith.select %15, %12, %16 : vector<2x128xi1>, vector<2x128xf32>
    %cst_12 = arith.constant dense<0xFF800000> : vector<2xf32>
    %18 = vector.multi_reduction <maximumf>, %17, %cst_12 [1] : vector<2x128xf32> to vector<2xf32>
    %19 = vector.shape_cast %18 : vector<2xf32> to vector<2x1xf32>
    %20 = vector.broadcast %19 : vector<2x1xf32> to vector<2x128xf32>
    %21 = arith.subf %17, %20 : vector<2x128xf32>
    %22 = math.exp %21 : vector<2x128xf32>
    %cst_13 = arith.constant dense<0.000000e+00> : vector<2xf32>
    %23 = vector.multi_reduction <add>, %22, %cst_13 [1] : vector<2x128xf32> to vector<2xf32>
    %24 = vector.shape_cast %23 : vector<2xf32> to vector<2x1xf32>
    %25 = tpu.reciprocal %24 : vector<2x1xf32> -> vector<2x1xf32>
    %26 = vector.broadcast %25 : vector<2x1xf32> to vector<2x128xf32>
    %27 = arith.mulf %22, %26 : vector<2x128xf32>
    %28 = arith.truncf %27 : vector<2x128xf32> to vector<2x128xbf16>
    %c0_14 = arith.constant 0 : index
    %c0_15 = arith.constant 0 : index
    %29 = vector.load %arg5[%c0_14, %c0_15] : memref<2x128xbf16, #tpu.memory_space<vmem>>, vector<2x128xbf16>
    tpu.vector_store %arg5[%c0_14, %c0_15], %28 {strides = array<i32>} : memref<2x128xbf16, #tpu.memory_space<vmem>>, vector<2x128xbf16>,
    return
  }
  func.func @transform_0(%arg0: i32) -> (i32, i32) {
    %c0_i32 = arith.constant 0 : i32
    %c0_i32_0 = arith.constant 0 : i32
    return %arg0, %c0_i32 : i32, i32
  }
  func.func @transform_1(%arg0: i32) -> (i32, i32) {
    %c0_i32 = arith.constant 0 : i32
    %c0_i32_0 = arith.constant 0 : i32
    %c0_i32_1 = arith.constant 0 : i32
    return %c0_i32, %c0_i32_0 : i32, i32
  }
  func.func @transform_2(%arg0: i32) -> (i32, i32) {
    %c0_i32 = arith.constant 0 : i32
    %c0_i32_0 = arith.constant 0 : i32
    %c0_i32_1 = arith.constant 0 : i32
    return %c0_i32, %c0_i32_0 : i32, i32
  }
  func.func @transform_3(%arg0: i32) -> (i32, i32) {
    %c0_i32 = arith.constant 0 : i32
    %c0_i32_0 = arith.constant 0 : i32
    %c0_i32_1 = arith.constant 0 : i32
    return %c0_i32, %c0_i32_0 : i32, i32
  }
  func.func @transform_4(%arg0: i32) -> (i32, i32) {
    %c0_i32 = arith.constant 0 : i32
    %c0_i32_0 = arith.constant 0 : i32
    return %arg0, %c0_i32 : i32, i32
  }
}

</mosaic_0001>

<bundles_post_ra>
// kernel: mlp_forward.1
= control target key start
LH: loop header
LB: loop body
LE: loop exit
PB: predicated region body
PF: predicated region fallthrough
CT: control target
= control target key end

     0   :  { %9 = vsyncpa [#allocation3], 0  ;;  %s1526_s0 = inlined_call_operand.vmem [shape: bf16[2,1024], index: 0, kind: input, shape index: {}]   ;;  %s1527_s1 = inlined_call_operand.hbm [shape: bf16[1024,128], index: 1, kind: input, shape index: {}]   ;;  %s1528_s2 = inlined_call_operand.vmem [shape: bf16[128,128], index: 2, kind: input, shape index: {}]   ;;  %s1529_s3 = inlined_call_operand.hbm [shape: bf16[128,128], index: 3, kind: input, shape index: {}]   ;;  %s1530_s4 = inlined_call_operand.hbm [shape: bf16[2,128], index: 4, kind: output, shape index: {}]  }
   0x1   :  { %10 = vsyncpa [#allocation6], 0 }
   0x2   :  { %11 = vsyncpa [#allocation4], 0  ;;  %s1415_s15 = smov [#allocation2]   ;;  %s1343_s19 = scalar_lea.hbm %s1527_s1, 8192 }
   0x3   :  { %s19_s16 = sshll.u32 %s1415_s15, 4  ;;  %p1344_p0 = scmp.ne.s32.totalorder %s1527_s1, %s1343_s19  ;;  %s20_s16 = int_to_ptr.vmem [resolvable:$true] %s19_s16 }
   0x4   :  { %p1347_p1 = scmp.lt.u32.totalorder %s1343_s19, %s1527_s1 }
   0x6   :  { %p1349_p2 = pnand %p1347_p1, %p1344_p0 }
   0x8   :  { %1352 = shalt.err (!%p1349_p2)
}
   0x9   :  { %s1353_s24 = scalar_lea.vmem %s20_s16, 8192  ;;  %p1358_p4 = scmp.lt.s32.totalorder %s20_s16, %s20_s16 }
   0xa   :  { %p1354_p3 = scmp.ne.s32.totalorder %s20_s16, %s1353_s24  ;;  %p1359_p5 = scmp.lt.s32.totalorder %s1353_s24, %s1353_s24 }
   0xc   :  { %p1360_p6 = por %p1359_p5, %p1358_p4 }
   0xe   :  { %p1361_p7 = pnand %p1360_p6, %p1354_p3 }
  0x10   :  { %1364 = shalt.err (!%p1361_p7)
}
  0x11   :  { %s1416_s25 = smov 64   ;;  %s1417_s26 = smov 4  }
  0x12   :  { %25 = dma.hbm_to_vmem [thread:$0]  %s1527_s1, 8192, %s20_s16, [#allocation3], %s1416_s25, %s1416_s25, %s1417_s26  }
  0x13   :  { %s1418_s29 = smov [#allocation5]   ;;  %s1365_s7 = scalar_lea.hbm %s1529_s3, 1024 }
  0x14   :  { %s33_s30 = sshll.u32 %s1418_s29, 4  ;;  %p1366_p8 = scmp.ne.s32.totalorder %s1529_s3, %s1365_s7  ;;  %s34_s30 = int_to_ptr.vmem [resolvable:$true] %s33_s30 }
  0x15   :  { %p1369_p9 = scmp.lt.u32.totalorder %s1365_s7, %s1529_s3 }
  0x17   :  { %p1371_p10 = pnand %p1369_p9, %p1366_p8 }
  0x19   :  { %1374 = shalt.err (!%p1371_p10)
}
  0x1a   :  { %s1375_s12 = scalar_lea.vmem %s34_s30, 1024  ;;  %p1380_p12 = scmp.lt.s32.totalorder %s34_s30, %s34_s30 }
  0x1b   :  { %p1376_p11 = scmp.ne.s32.totalorder %s34_s30, %s1375_s12  ;;  %p1381_p13 = scmp.lt.s32.totalorder %s1375_s12, %s1375_s12 }
  0x1d   :  { %p1382_p0 = por %p1381_p13, %p1380_p12 }
  0x1f   :  { %p1383_p1 = pnand %p1382_p0, %p1376_p11 }
  0x21   :  { %1386 = shalt.err (!%p1383_p1)
}
  0x22   :  { %39 = dma.hbm_to_vmem [thread:$0]  %s1529_s3, 1024, %s34_s30, [#allocation6], %s1416_s25, %s1416_s25, %s1417_s26  }
  0x23   :  { %1409 = dma.done.wait [#allocation3], 8192  }
  0x24   :  { %1410 = vsyncadd [#allocation3], 4294959104 }
  0x25   :  { %1411 = dma.done.wait [#allocation6], 1024  }
  0x26   :  { %1412 = vsyncadd [#allocation6], 4294966272  ;;  %v1258_v0 = vld [vmem:[#allocation2 + $0x40] sm:$0xff]   ;;  %v1262_v4 = vld [vmem:[#allocation2 + $0x48] sm:$0xff]   ;;  %v1419_v22 = vmov 1966171168   ;;  %v181_v24 = vlaneseq }
  0x27   :  { %v1259_v1 = vld [vmem:[#allocation2 + $0xc0] sm:$0xff]   ;;  %1104 = vmatprep.subr.bf16.mxu0 %v1258_v0  ;;  %v1263_v5 = vld [vmem:[#allocation2 + $0xc8] sm:$0xff]   ;;  %v1266_v8 = vld [vmem:[#allocation2 + $0x50] sm:$0xff]   ;;  %v179_v23 = vunpack.c.l.s4 %v1419_v22  ;;  %vm1421_vm0 = vmmov 0   ;;  %vm994_vm2 = vcmask 1041408  }
  0x28   :  { %v1260_v2 = vld [vmem:[#allocation2] sm:$0xff]   ;;  %1126 = vmatprep.subr.bf16.mxu1 %v1259_v1  ;;  %v1264_v6 = vld [vmem:[#allocation2 + $0x8] sm:$0xff]   ;;  %v1267_v9 = vld [vmem:[#allocation2 + $0xd0] sm:$0xff]   ;;  %v182_v30 = vshrl.u32 %v181_v24, 7 }
  0x29   :  { %v1261_v3 = vld [vmem:[#allocation2 + $0x80] sm:$0xff]   ;;  %1105 = vmatpush3.bf16.msra.mxu0 %v1260_v2  ;;  %v1265_v7 = vld [vmem:[#allocation2 + $0x88] sm:$0xff]   ;;  %v1268_v10 = vld [vmem:[#allocation2 + $0x10] sm:$0xff]   ;;  %v180_v29 = vunpack.c.0.s8 %v179_v23 }
  0x2a   :  { %1127 = vmatpush3.bf16.msra.mxu1 %v1261_v3  ;;  %1106 = vmatprep.subr.bf16.mxu0 %v1262_v4  ;;  %v1269_v11 = vld [vmem:[#allocation2 + $0x90] sm:$0xff]   ;;  %v1270_v12 = vld [vmem:[#allocation2 + $0x58] sm:$0xff]   ;;  %v1274_v16 = vld [vmem:[#allocation2 + $0x60] sm:$0xff]  }
  0x2b   :  { %1128 = vmatprep.subr.bf16.mxu1 %v1263_v5  ;;  %v1271_v13 = vld [vmem:[#allocation2 + $0xd8] sm:$0xff]   ;;  %v1275_v17 = vld [vmem:[#allocation2 + $0xe0] sm:$0xff]   ;;  %v1278_v20 = vld [vmem:[#allocation2 + $0x68] sm:$0xff]   ;;  %v1473_v35 = vsub.s32 %v180_v29, %v182_v30 }
  0x2c   :  { %v1272_v14 = vld [vmem:[#allocation2 + $0x18] sm:$0xff]   ;;  %v1276_v18 = vld [vmem:[#allocation2 + $0x20] sm:$0xff]   ;;  %v1279_v21 = vld [vmem:[#allocation2 + $0xe8] sm:$0xff]  }
  0x2d   :  { %1107 = vmatpush3.bf16.msra.mxu0 %v1264_v6  ;;  %v1273_v15 = vld [vmem:[#allocation2 + $0x98] sm:$0xff]   ;;  %v1277_v19 = vld [vmem:[#allocation2 + $0xa0] sm:$0xff]   ;;  %v1280_v25 = vld [vmem:[#allocation2 + $0x28] sm:$0xff]  }
  0x2e   :  { %1129 = vmatpush3.bf16.msra.mxu1 %v1265_v7  ;;  %1108 = vmatprep.subr.bf16.mxu0 %v1266_v8  ;;  %v1281_v26 = vld [vmem:[#allocation2 + $0xa8] sm:$0xff]   ;;  %v1282_v27 = vld [vmem:[#allocation2 + $0x70] sm:$0xff]   ;;  %v1286_v33 = vld [vmem:[#allocation2 + $0x78] sm:$0xff]  }
  0x2f   :  { %1130 = vmatprep.subr.bf16.mxu1 %v1267_v9  ;;  %v1283_v28 = vld [vmem:[#allocation2 + $0xf0] sm:$0xff]   ;;  %v1287_v34 = vld [vmem:[#allocation2 + $0xf8] sm:$0xff]   ;;  %v47_v38 = vld [vmem:[%s1526_s0] sm:$0xff] }
  0x30   :  { %v1284_v31 = vld [vmem:[#allocation2 + $0x30] sm:$0xff]   ;;  %v1288_v36 = vld [vmem:[#allocation2 + $0x38] sm:$0xff]   ;;  %v177_v39 = vcombine.high %v47_v38, %v47_v38  ;;  %v184_v40 = vrot.slane %v47_v38, %v1473_v35  ;;  %v1291_v41 = vld [vmem:[#allocation2 + $0x140] sm:$0xff]  }
  0x31   :  { %1109 = vmatpush3.bf16.msra.mxu0 %v1268_v10  ;;  %v1285_v32 = vld [vmem:[#allocation2 + $0xb0] sm:$0xff]   ;;  %v1289_v37 = vld [vmem:[#allocation2 + $0xb8] sm:$0xff]   ;;  %v1292_v42 = vld [vmem:[#allocation2 + $0x1c0] sm:$0xff]  }
  0x32   :  { %1131 = vmatpush3.bf16.msra.mxu1 %v1269_v11  ;;  %1110 = vmatprep.subr.bf16.mxu0 %v1270_v12  ;;  %v192_v43 = vcombine.high %v184_v40, %v184_v40  ;;  %v200_v44 = vrot.slane %v184_v40, %v1473_v35  ;;  %v1481_v45 = vrot.slane %v177_v39, %v1473_v35  ;;  %v1293_v46 = vld [vmem:[#allocation2 + $0x100] sm:$0xff]   ;;  %v1295_v51 = vld [vmem:[#allocation2 + $0x148] sm:$0xff]   ;;  %v1299_v58 = vld [vmem:[#allocation2 + $0x150] sm:$0xff]  }
  0x33   :  { %1132 = vmatprep.subr.bf16.mxu1 %v1271_v13  ;;  %v1294_v48 = vld [vmem:[#allocation2 + $0x180] sm:$0xff]   ;;  %v1296_v53 = vld [vmem:[#allocation2 + $0x1c8] sm:$0xff]   ;;  %v1300_v59 = vld [vmem:[#allocation2 + $0x1d0] sm:$0xff]  }
  0x34   :  { %v214_v47 = vrot.slane %v192_v43, %v1473_v35  ;;  %v193_v49 = vcombine.high %v1481_v45, %v1481_v45  ;;  %v222_v50 = vcombine.high %v200_v44, %v200_v44  ;;  %v1297_v55 = vld [vmem:[#allocation2 + $0x108] sm:$0xff]   ;;  %v1301_v60 = vld [vmem:[#allocation2 + $0x110] sm:$0xff]   ;;  %v1303_v62 = vld [vmem:[#allocation2 + $0x158] sm:$0xff]  }
  0x35   :  { %1111 = vmatpush3.bf16.msra.mxu0 %v1272_v14  ;;  %v1298_v56 = vld [vmem:[#allocation2 + $0x188] sm:$0xff]   ;;  %v1302_v61 = vld [vmem:[#allocation2 + $0x190] sm:$0xff]   ;;  %v1304_v63 = vld [vmem:[#allocation2 + $0x1d8] sm:$0xff]  }
  0x36   :  { %1133 = vmatpush3.bf16.msra.mxu1 %v1273_v15  ;;  %1112 = vmatprep.subr.bf16.mxu0 %v1274_v16  ;;  %v224_v52 = vcombine.high %v214_v47, %v214_v47  ;;  %v221_v54 = vrot.slane %v193_v49, %v1473_v35  ;;  %v1305_v0 = vld [vmem:[#allocation2 + $0x118] sm:$0xff]   ;;  %v1307_v2 = vld [vmem:[#allocation2 + $0x160] sm:$0xff]   ;;  %v1311_v6 = vld [vmem:[#allocation2 + $0x168] sm:$0xff]  }
  0x37   :  { %1134 = vmatprep.subr.bf16.mxu1 %v1275_v17  ;;  %650 = vmatprep.mubr.bf16.mxu0 %v214_v47  ;;  %v1306_v1 = vld [vmem:[#allocation2 + $0x198] sm:$0xff]   ;;  %v1308_v3 = vld [vmem:[#allocation2 + $0x1e0] sm:$0xff]   ;;  %v1312_v7 = vld [vmem:[#allocation2 + $0x1e8] sm:$0xff]  }
  0x38   :  { %690 = vmatprep.mubr.bf16.mxu1 %v224_v52  ;;  %v225_v57 = vcombine.high %v221_v54, %v221_v54  ;;  %v1309_v4 = vld [vmem:[#allocation2 + $0x120] sm:$0xff]   ;;  %v1313_v8 = vld [vmem:[#allocation2 + $0x128] sm:$0xff]   ;;  %v1315_v10 = vld [vmem:[#allocation2 + $0x170] sm:$0xff]  }
  0x39   :  { %1113 = vmatpush3.bf16.msra.mxu0 %v1276_v18  ;;  %v1310_v5 = vld [vmem:[#allocation2 + $0x1a0] sm:$0xff]   ;;  %v1314_v9 = vld [vmem:[#allocation2 + $0x1a8] sm:$0xff]   ;;  %v1316_v11 = vld [vmem:[#allocation2 + $0x1f0] sm:$0xff]   ;;  %v207_v18 = vrot.slane %v1481_v45, %v1473_v35 }
  0x3a   :  { %1135 = vmatpush3.bf16.msra.mxu1 %v1277_v19  ;;  %1114 = vmatprep.subr.bf16.mxu0 %v1278_v20  ;;  %v1317_v12 = vld [vmem:[#allocation2 + $0x130] sm:$0xff]   ;;  %v1319_v14 = vld [vmem:[#allocation2 + $0x178] sm:$0xff]   ;;  %v1323_v20 = vld [vmem:[%s1528_s2] sm:$0xff]  }
  0x3b   :  { %1136 = vmatprep.subr.bf16.mxu1 %v1279_v21  ;;  %v1318_v13 = vld [vmem:[#allocation2 + $0x1b0] sm:$0xff]   ;;  %v1320_v15 = vld [vmem:[#allocation2 + $0x1f8] sm:$0xff]   ;;  %v223_v19 = vcombine.high %v207_v18, %v207_v18  ;;  %v1420_v21 = vmov 0.0   ;;  %v1324_v22 = vld [vmem:[%s1528_s2 + $0x8] sm:$0xff]  }
  0x3c   :  { %v1321_v16 = vld [vmem:[#allocation2 + $0x138] sm:$0xff]   ;;  %v1325_v23 = vld [vmem:[%s1528_s2 + $0x10] sm:$0xff]   ;;  %v1331_v30 = vld [vmem:[#allocation5] sm:$0xff]  }
  0x3d   :  { %1115 = vmatpush3.bf16.msra.mxu0 %v1280_v25  ;;  %v1322_v17 = vld [vmem:[#allocation2 + $0x1b8] sm:$0xff]   ;;  %v1336_v35 = vld [vmem:[#allocation5 + $0x28] sm:$0xff]  }
  0x3e   :  { %1137 = vmatpush3.bf16.msra.mxu1 %v1281_v26  ;;  %1116 = vmatprep.subr.bf16.mxu0 %v1282_v27  ;;  %v1326_v25 = vld [vmem:[%s1528_s2 + $0x18] sm:$0xff]   ;;  %v1327_v26 = vld [vmem:[%s1528_s2 + $0x20] sm:$0xff]   ;;  %v1328_v27 = vld [vmem:[%s1528_s2 + $0x28] sm:$0xff]  }
  0x3f   :  { %1138 = vmatprep.subr.bf16.mxu1 %v1283_v28  ;;  %v1329_v28 = vld [vmem:[%s1528_s2 + $0x30] sm:$0xff]   ;;  %v1330_v29 = vld [vmem:[%s1528_s2 + $0x38] sm:$0xff]   ;;  %s1422_s2 = smov [#allocation7]  }
  0x40   :  { %s1014_s30 = sshll.u32 %s1422_s2, 4  ;;  %s1015_s30 = int_to_ptr.vmem [resolvable:$true] %s1014_s30 }
  0x41   :  { %1117 = vmatpush3.bf16.msra.mxu0 %v1284_v31  ;;  %v1332_v31 = vld [vmem:[#allocation5 + $0x8] sm:$0xff]   ;;  %s1387_s5 = scalar_lea.vmem %s1015_s30, 16  ;;  %s1391_s6 = scalar_lea.vmem %s1015_s30, 32 }
  0x42   :  { %1139 = vmatpush3.bf16.msra.mxu1 %v1285_v32  ;;  %1118 = vmatprep.subr.bf16.mxu0 %v1286_v33  ;;  %v1333_v32 = vld [vmem:[#allocation5 + $0x10] sm:$0xff]   ;;  %v1334_v33 = vld [vmem:[#allocation5 + $0x18] sm:$0xff]   ;;  %p1388_p2 = scmp.ne.s32.totalorder %s1015_s30, %s1387_s5  ;;  %p1392_p3 = scmp.lt.s32.totalorder %s1015_s30, %s1015_s30 }
  0x43   :  { %1140 = vmatprep.subr.bf16.mxu1 %v1287_v34  ;;  %v1335_v34 = vld [vmem:[#allocation5 + $0x20] sm:$0xff]   ;;  %p1393_p4 = scmp.lt.s32.totalorder %s1391_s6, %s1387_s5 }
  0x45   :  { %1119 = vmatpush3.bf16.msra.mxu0 %v1288_v36  ;;  %v1337_v36 = vld [vmem:[#allocation5 + $0x30] sm:$0xff]   ;;  %p1394_p5 = por %p1393_p4, %p1392_p3 }
  0x46   :  { %1141 = vmatpush3.bf16.msra.mxu1 %v1289_v37  ;;  %1148 = vmatprep.subr.bf16.mxu0 %v1291_v41 }
  0x47   :  { %1170 = vmatprep.subr.bf16.mxu1 %v1292_v42  ;;  %p1395_p6 = pnand %p1394_p5, %p1388_p2 }
  0x48   :  { %651 = vmatmul.mubr.bf16.vlgmr.msra.gmra.mrb[0].mxu0 %v200_v44 }
  0x49   :  { %1149 = vmatpush3.bf16.msra.mxu0 %v1293_v46  ;;  %691 = vmatmul.mubr.bf16.vlgmr.msra.gmra.mrb[0].mxu1 %v222_v50 }
  0x4a   :  { %1150 = vmatprep.subr.bf16.mxu0 %v1295_v51  ;;  %1171 = vmatpush3.bf16.msra.mxu1 %v1294_v48 }
  0x4b   :  { %730 = vmatprep.mubr.bf16.mxu0 %v221_v54  ;;  %1172 = vmatprep.subr.bf16.mxu1 %v1296_v53 }
  0x4c   :  { %770 = vmatprep.mubr.bf16.mxu1 %v225_v57 }
  0x4d   :  { %1151 = vmatpush3.bf16.msra.mxu0 %v1297_v55 }
  0x4e   :  { %1152 = vmatprep.subr.bf16.mxu0 %v1299_v58  ;;  %1173 = vmatpush3.bf16.msra.mxu1 %v1298_v56 }
  0x4f   :  { %1174 = vmatprep.subr.bf16.mxu1 %v1300_v59 }
  0x51   :  { %1153 = vmatpush3.bf16.msra.mxu0 %v1301_v60 }
  0x52   :  { %1154 = vmatprep.subr.bf16.mxu0 %v1303_v62  ;;  %1175 = vmatpush3.bf16.msra.mxu1 %v1302_v61  ;;  %v1338_v62 = vld [vmem:[#allocation5 + $0x38] sm:$0xff]  }
  0x53   :  { %1176 = vmatprep.subr.bf16.mxu1 %v1304_v63 }
  0x55   :  { %1155 = vmatpush3.bf16.msra.mxu0 %v1305_v0 }
  0x56   :  { %1156 = vmatprep.subr.bf16.mxu0 %v1307_v2  ;;  %1177 = vmatpush3.bf16.msra.mxu1 %v1306_v1 }
  0x57   :  { %1178 = vmatprep.subr.bf16.mxu1 %v1308_v3 }
  0x59   :  { %1157 = vmatpush3.bf16.msra.mxu0 %v1309_v4 }
  0x5a   :  { %1158 = vmatprep.subr.bf16.mxu0 %v1311_v6  ;;  %1179 = vmatpush3.bf16.msra.mxu1 %v1310_v5  ;;  %v991_v5 = vand.u32 127, %v181_v24 }
  0x5b   :  { %1180 = vmatprep.subr.bf16.mxu1 %v1312_v7 }
  0x5c   :  { %vm992_vm1 = vcmp.lt.s32.totalorder %v991_v5, 10 }
  0x5d   :  { %1159 = vmatpush3.bf16.msra.mxu0 %v1313_v8 }
  0x5e   :  { %1160 = vmatprep.subr.bf16.mxu0 %v1315_v10  ;;  %1181 = vmatpush3.bf16.msra.mxu1 %v1314_v9 }
  0x5f   :  { %1182 = vmatprep.subr.bf16.mxu1 %v1316_v11 }
  0x61   :  { %1161 = vmatpush3.bf16.msra.mxu0 %v1317_v12 }
  0x62   :  { %1162 = vmatprep.subr.bf16.mxu0 %v1319_v14  ;;  %1183 = vmatpush3.bf16.msra.mxu1 %v1318_v13 }
  0x63   :  { %1184 = vmatprep.subr.bf16.mxu1 %v1320_v15 }
  0x65   :  { %1163 = vmatpush3.bf16.msra.mxu0 %v1321_v16 }
  0x66   :  { %1185 = vmatpush3.bf16.msra.mxu1 %v1322_v17  ;;  %1210 = vmatprep.subr.bf16.mxu0 %v1420_v21 }
  0x67   :  { %1230 = vmatprep.subr.bf16.mxu1 %v1420_v21 }
  0x68   :  { %731 = vmatmul.mubr.bf16.vlgmr.msra.gmra.mrb[4].mxu0 %v207_v18 }
  0x69   :  { %771 = vmatmul.mubr.bf16.vlgmr.msra.gmra.mrb[4].mxu1 %v223_v19  ;;  %1211 = vmatpush3.bf16.msra.mxu0 %v1323_v20 }
  0x6a   :  { %1212 = vmatprep.subr.bf16.mxu0 %v1420_v21  ;;  %1226 = vmatprep.mubr.msk.bf16.mxu0 %vm1421_vm0, %v1420_v21 }
  0x6b   :  { %1246 = vmatprep.mubr.msk.bf16.mxu1 %vm1421_vm0, %v1420_v21  ;;  %1231 = vmatpush3.bf16.msra.mxu1 %v1331_v30 }
  0x6c   :  { %1232 = vmatprep.subr.bf16.mxu1 %v1420_v21 }
  0x6d   :  { %1213 = vmatpush3.bf16.msra.mxu0 %v1324_v22 }
  0x6e   :  { %1214 = vmatprep.subr.bf16.mxu0 %v1420_v21 }
  0x6f   :  { %1233 = vmatpush3.bf16.msra.mxu1 %v1332_v31 }
  0x70   :  { %1234 = vmatprep.subr.bf16.mxu1 %v1420_v21 }
  0x71   :  { %1215 = vmatpush3.bf16.msra.mxu0 %v1325_v23 }
  0x72   :  { %1216 = vmatprep.subr.bf16.mxu0 %v1420_v21 }
  0x73   :  { %1235 = vmatpush3.bf16.msra.mxu1 %v1333_v32 }
  0x74   :  { %1236 = vmatprep.subr.bf16.mxu1 %v1420_v21 }
  0x75   :  { %1217 = vmatpush3.bf16.msra.mxu0 %v1326_v25 }
  0x76   :  { %1218 = vmatprep.subr.bf16.mxu0 %v1420_v21 }
  0x77   :  { %1237 = vmatpush3.bf16.msra.mxu1 %v1334_v33 }
  0x78   :  { %1238 = vmatprep.subr.bf16.mxu1 %v1420_v21 }
  0x79   :  { %1219 = vmatpush3.bf16.msra.mxu0 %v1327_v26 }
  0x7a   :  { %1220 = vmatprep.subr.bf16.mxu0 %v1420_v21 }
  0x7b   :  { %1239 = vmatpush3.bf16.msra.mxu1 %v1335_v34 }
  0x7c   :  { %1240 = vmatprep.subr.bf16.mxu1 %v1420_v21 }
  0x7d   :  { %1221 = vmatpush3.bf16.msra.mxu0 %v1328_v27 }
  0x7e   :  { %1222 = vmatprep.subr.bf16.mxu0 %v1420_v21 }
  0x7f   :  { %1241 = vmatpush3.bf16.msra.mxu1 %v1336_v35 }
  0x80   :  { %1242 = vmatprep.subr.bf16.mxu1 %v1420_v21 }
  0x81   :  { %1223 = vmatpush3.bf16.msra.mxu0 %v1329_v28 }
  0x82   :  { %1224 = vmatprep.subr.bf16.mxu0 %v1420_v21 }
  0x83   :  { %1243 = vmatpush3.bf16.msra.mxu1 %v1337_v36 }
  0x84   :  { %1244 = vmatprep.subr.bf16.mxu1 %v1420_v21 }
  0x85   :  { %1225 = vmatpush3.bf16.msra.mxu0 %v1330_v29 }
  0x87   :  { %1245 = vmatpush3.bf16.msra.mxu1 %v1338_v62 }
 0x11b   :  { %v1120_v37 = vpop.f32.mrb[0].mxu0 }
 0x11c   :  { %v1121_v38 = vpop.f32.mrb[1].mxu0  ;;  %v1142_v39 = vpop.f32.mrb[0].mxu1 }
 0x11d   :  { %v1122_v40 = vadd.f32 %v1121_v38, %v1120_v37  ;;  %v1123_v41 = vpop.f32.mrb[2].mxu0  ;;  %v1143_v42 = vpop.f32.mrb[1].mxu1 }
 0x11e   :  { %v1124_v43 = vpop.f32.mrb[3].mxu0  ;;  %v1144_v44 = vadd.f32 %v1143_v42, %v1142_v39  ;;  %v1145_v45 = vpop.f32.mrb[2].mxu1 }
 0x11f   :  { %v1146_v46 = vpop.f32.mrb[3].mxu1 }
 0x120   :  { %v693_v47 = vadd.f32 %v1144_v44, %v1122_v40 }
 0x13b   :  { %v1164_v48 = vpop.f32.mrb[4].mxu0 }
 0x13c   :  { %v1165_v49 = vpop.f32.mrb[5].mxu0  ;;  %v1186_v50 = vpop.f32.mrb[4].mxu1 }
 0x13d   :  { %v1166_v51 = vadd.f32 %v1165_v49, %v1164_v48  ;;  %v1167_v52 = vpop.f32.mrb[6].mxu0  ;;  %v1187_v53 = vpop.f32.mrb[5].mxu1 }
 0x13e   :  { %v1168_v54 = vpop.f32.mrb[7].mxu0  ;;  %v1188_v56 = vadd.f32 %v1187_v53, %v1186_v50  ;;  %v1189_v57 = vpop.f32.mrb[6].mxu1 }
 0x13f   :  { %v733_v55 = vadd.f32 %v1166_v51, %v693_v47  ;;  %v1190_v58 = vpop.f32.mrb[7].mxu1 }
 0x141   :  { %v773_v59 = vadd.f32 %v1188_v56, %v733_v55 }
 0x143   :  { %v778_v60 = vmax.f32 %v773_v59, 0.0 }
 0x145   :  { %v779_v61 = vpack.c.bf16 %v778_v60, %v778_v60 }
 0x147   :  { %1227 = vmatmul.mubr.bf16.vlgmr.msra.gmra.mrb[8].mxu0 %v779_v61 }
 0x21a   :  { %v878_v63 = vpop.f32.mrb[8].mxu0 }
 0x21b   :  { %v884_v0 = vmax.f32 %v878_v63, 0.0  ;;  %v1228_v1 = vpop.f32.mrb[9].mxu0 }
 0x21c   :  { %v881_v2 = vpop.f32.mrb[10].mxu0 }
 0x21d   :  { %v885_v3 = vpack.c.bf16 %v884_v0, %v884_v0  ;;  %v1229_v4 = vpop.f32.mrb[11].mxu0 }
 0x21f   :  { %1247 = vmatmul.mubr.bf16.vlgmr.msra.gmra.mrb[8].mxu1 %v885_v3 }
 0x2f2   :  { %v984_v6 = vpop.f32.mrb[8].mxu1 }
 0x2f3   :  { %v993_v7 = vsel %vm992_vm1, %v984_v6, -inf  ;;  %v1248_v8 = vpop.f32.mrb[9].mxu1 }
 0x2f4   :  { %v987_v9 = vpop.f32.mrb[10].mxu1  ;;  %v995_v10 = vsel %vm994_vm2, %v993_v7, -inf }
 0x2f5   :  { %996 = vmax.xlane.f32.xlu0 %v995_v10  ;;  %v1249_v11 = vpop.f32.mrb[11].mxu1 }
 0x382   :  { %v997_v12 = vpop.xlane.xlu0 %996 }
 0x383   :  { %v998_v13 = vsub.f32 %v993_v7, %v997_v12 }
 0x385   :  { %v999_v14 = vmul.f32 1.442695, %v998_v13 }
 0x387   :  { %1339 = vpow2.f32 %v999_v14 }
 0x391   :  { %v1340_v15 = vpop.eup %1339 }
 0x392   :  { %v1001_v16 = vsel %vm994_vm2, %v1340_v15, 0.0 }
 0x393   :  { %1002 = vadd.xlane.f32.xlu0 %v1001_v16 }
 0x420   :  { %v1003_v17 = vpop.xlane.xlu0 %1002 }
 0x421   :  { %1341 = vrcp.f32 %v1003_v17 }
 0x42b   :  { %v1342_v18 = vpop.eup %1341 }
 0x42c   :  { %v1005_v24 = vmul.f32 %v1342_v18, %v1340_v15 }
 0x42e   :  { %v1006_v19 = vpack.c.bf16 %v1005_v24, %v1005_v24 }
 0x430   :  { %1007 = vst [vmem:[#allocation7] sm:$0x1] %v1006_v19 }
 0x431   :  { %1398 = shalt.err (!%p1395_p6)
}
 0x432   :  { %s1399_s9 = scalar_lea.hbm %s1530_s4, 16 }
 0x433   :  { %p1400_p7 = scmp.ne.s32.totalorder %s1530_s4, %s1399_s9  ;;  %p1403_p8 = scmp.lt.u32.totalorder %s1399_s9, %s1530_s4 }
 0x435   :  { %p1405_p9 = pnand %p1403_p8, %p1400_p7 }
 0x437   :  { %1408 = shalt.err (!%p1405_p9)
}
 0x438   :  { %1017 = dma.vmem_to_hbm [thread:$0]  %s1015_s30, 16, %s1530_s4, [#allocation4]  }
 0x439   :  { %1413 = dma.done.wait [#allocation4], 16  }
 0x43a   :  { %1414 = vsyncadd [#allocation4], 4294967280 }
 0x43b   :  { %1021 = vsyncpa [#allocation3], 1 }
 0x43c   :  { %1022 = vsyncpa [#allocation6], 1 }
 0x43d   :  { %1023 = vsyncpa [#allocation4], 1 }

</bundles_post_ra>
